<compile_context>
chip_gen: v7x
topology: tpu7x:2x2x1
jax: 0.10.0
libtpu: 0.0.40
codegen_flags: <defaults>
</compile_context>

<pallas_src>
import functools

import jax
import jax.numpy as jnp
from jax import lax
from jax.experimental import pallas as pl
from jax.experimental.pallas import tpu as pltpu

KH = KW = 3  # 3x3 conv, padding=1, stride=1


# ----------------------------- Pallas kernel --------------------------------
def _conv3x3_relu_kernel(x_ref, w_ref, b_ref, o_ref, patch_ref, *, width, cin):
    """Fused 3x3 conv (pad=1) + bias + ReLU for a block of `bb` batch elements.

    x_ref:     [bb, Cin, H*W + 2*(W+1)]  flat-padded input (no im2col on host).
    w_ref:     [Cout, K_pad]             flattened weight, zero-padded to K_pad;
                                         column (di*KW + dj)*Cin + ci.
    b_ref:     [Cout, 1]                 bias as a sublane vector.
    o_ref:     [bb, Cout, H*W]           lane-dense output block.
    patch_ref: [K_pad, bb*H*W]           VMEM scratch holding the im2col patch.
    """
    bb = x_ref.shape[0]
    cout, k_pad = w_ref.shape
    hw = o_ref.shape[2]
    k_raw = KH * KW * cin

    # W-boundary validity masks, built in-kernel (no extra HBM input, no DMA).
    wpos = lax.broadcasted_iota(jnp.int32, (1, hw), 1) % width
    mask_l = wpos != 0          # dj==0 tap reads col w-1 of the previous row when w == 0
    mask_r = wpos != width - 1  # dj==2 tap reads col w+1 of the next row when w == W-1

    # Zero the K-padding rows: weight columns there are zero, but 0 * garbage
    # (possibly NaN in uninitialized VMEM) would poison the MXU accumulation.
    if k_pad > k_raw:
        patch_ref[k_raw:, :] = jnp.zeros((k_pad - k_raw, bb * hw), jnp.float32)

    # Build the [K, bb*HW] patch tile with 9 statically shifted, select-masked
    # slices per batch element (shift lands on the XLU/load path, not VALU).
    for b in range(bb):
        col0 = b * hw
        for di in range(KH):
            for dj in range(KW):
                start = di * width + dj
                xs = x_ref[b, :, start:start + hw]          # [Cin, HW]
                if dj == 0:
                    xs = jnp.where(mask_l, xs, 0.0)         # NaN-safe select mask
                elif dj == KW - 1:
                    xs = jnp.where(mask_r, xs, 0.0)
                base = (di * KW + dj) * cin
                patch_ref[base:base + cin, col0:col0 + hw] = xs

    # One MXU contraction for the whole batch block.  HIGHEST precision keeps
    # the f32 accuracy of the reference conv (default bf16 pass would not).
    res = jnp.dot(w_ref[...], patch_ref[...],
                  precision=lax.Precision.HIGHEST,
                  preferred_element_type=jnp.float32)       # [Cout, bb*HW]

    bias = b_ref[...]                                       # [Cout, 1]
    for b in range(bb):
        o_ref[b, :, :] = jnp.maximum(res[:, b * hw:(b + 1) * hw] + bias, 0.0)


# ------------------------------- wrapper -------------------------------------
def prepare_conv_params(weight_oihw, bias):
    """Hoisted out of the per-call path: flatten weight/bias once at init time."""
    cout, cin, kh, kw = weight_oihw.shape
    k_raw = kh * kw * cin
    k_pad = ((k_raw + 7) // 8) * 8                          # sublane-align K
    # [Cout, Cin, KH, KW] -> [Cout, KH*KW*Cin], column (di*KW + dj)*Cin + ci.
    w_flat = weight_oihw.transpose(0, 2, 3, 1).reshape(cout, k_raw)
    w_flat = jnp.pad(w_flat, ((0, 0), (0, k_pad - k_raw)))  # zero K padding
    b_col = bias.reshape(cout, 1)
    return w_flat, b_col


def _batch_block(n):
    """Whole batch per grid step on single-TC chips; split over 2 steps on v7x."""
    try:
        kind = jax.devices()[0].device_kind.lower()
    except Exception:
        kind = ""
    if "v7" in kind and n > 1 and n % 2 == 0:
        return n // 2          # 2 steps -> one per TensorCore (dimension "parallel")
    return n                   # v5e/v6e: 1 step, minimal per-step overhead


@jax.jit
def conv2d_relu_pallas(x_nchw, w_flat, b_col):
    """nn.Conv2d(Cin, Cout, 3, padding=1) + ReLU; NCHW in / NCHW out."""
    n, cin, h, w = x_nchw.shape
    cout, k_pad = w_flat.shape
    hw = h * w
    pad_flat = hw + 2 * (w + 1)

    # Single host-side pad: flatten (H, W) and pad the flat axis by W+1 per
    # side (== pad H by one row then pad flat by 1) so every (di, dj) patch
    # shift is the static slice [di*W + dj : di*W + dj + H*W] inside the kernel.
    xf = jnp.pad(x_nchw.reshape(n, cin, hw), ((0, 0), (0, 0), (w + 1, w + 1)))

    bb = _batch_block(n)
    grid = (n // bb,)

    cost = pl.CostEstimate(
        flops=2 * n * cout * hw * KH * KW * cin,
        transcendentals=0,
        bytes_accessed=4 * (n * cin * pad_flat + cout * k_pad + cout + n * cout * hw),
    )

    out_flat = pl.pallas_call(
        functools.partial(_conv3x3_relu_kernel, width=w, cin=cin),
        out_shape=jax.ShapeDtypeStruct((n, cout, hw), jnp.float32),
        grid=grid,
        in_specs=[
            pl.BlockSpec((bb, cin, pad_flat), lambda i: (i, 0, 0)),
            pl.BlockSpec((cout, k_pad), lambda i: (0, 0)),
            pl.BlockSpec((cout, 1), lambda i: (0, 0)),
        ],
        out_specs=pl.BlockSpec((bb, cout, hw), lambda i: (i, 0, 0)),
        scratch_shapes=[pltpu.VMEM((k_pad, bb * hw), jnp.float32)],
        compiler_params=pltpu.CompilerParams(
            dimension_semantics=("parallel",)),   # batch blocks across TCs (v7x)
        cost_estimate=cost,
    )(xf, w_flat, b_col)

    # Lane-dense [N, Cout, H*W] -> NCHW is a pure reshape (no transpose).
    return out_flat.reshape(n, cout, h, w)


def module_wrapper_forward(x, prepared_params):
    # ModuleWrapper.forward(x) == self.module(x): pure delegation.
    w_flat, b_col = prepared_params
    return conv2d_relu_pallas(x, w_flat, b_col)


# ------------------------------- reference -----------------------------------
def reference_forward(x, params):
    weight, bias = params
    out = lax.conv_general_dilated(
        x, weight,
        window_strides=(1, 1),
        padding=((1, 1), (1, 1)),
        dimension_numbers=("NCHW", "OIHW", "NCHW"),
        precision=lax.Precision.HIGHEST,
    )
    return jnp.maximum(out + bias.reshape(1, -1, 1, 1), 0.0)


if __name__ == "__main__":
    key = jax.random.PRNGKey(0)
    kx, kw_, kb = jax.random.split(key, 3)

    N, Cin, H, W = 2, 4, 16, 16
    Cout = 8

    x = jax.random.normal(kx, (N, Cin, H, W), dtype=jnp.float32)
    weight = jax.random.normal(kw_, (Cout, Cin, KH, KW), dtype=jnp.float32) * 0.1
    bias = jax.random.normal(kb, (Cout,), dtype=jnp.float32) * 0.1

    # "Module init": weight prep done once, outside the per-call jitted path.
    prepared = prepare_conv_params(weight, bias)

    out = jax.block_until_ready(module_wrapper_forward(x, prepared))
    ref = jax.block_until_ready(reference_forward(x, (weight, bias)))

    assert out.shape == (N, Cout, H, W), out.shape
    max_err = float(jnp.max(jnp.abs(out - ref)))
    assert max_err < 1e-4, max_err

    print("KERNEL_OK")
</pallas_src>

<mosaic_0001>
module attributes {stable_mosaic.version = 11 : i64} {
  func.func @_conv3x3_relu_kernel(%arg0: i32, %arg1: memref<2x4x290xf32, #tpu.memory_space<vmem>>, %arg2: memref<8x40xf32, #tpu.memory_space<vmem>>, %arg3: memref<8x1xf32, #tpu.memory_space<vmem>>, %arg4: memref<2x8x256xf32, #tpu.memory_space<vmem>>, %arg5: memref<40x512xf32, #tpu.memory_space<vmem>>) attributes {dimension_semantics = [#tpu.dimension_semantics<parallel>], iteration_bounds = array<i64: 1>, scalar_prefetch = 0 : i64, scratch_operands = 1 : i64, tpu.core_type = #tpu.core_type<tc>, window_params = [{transform_indices = @transform_0, window_bounds = array<i64: 2, 4, 290>}, {pipeline_mode = #tpu.pipeline_mode<synchronous>, transform_indices = @transform_1, window_bounds = array<i64: 8, 40>}, {pipeline_mode = #tpu.pipeline_mode<synchronous>, transform_indices = @transform_2, window_bounds = array<i64: 8, 1>}, {transform_indices = @transform_3, window_bounds = array<i64: 2, 8, 256>}]} {
    %0 = tpu.iota {dimensions = array<i32: 1>} : vector<1x256xi32>
    %c16_i32 = arith.constant 16 : i32
    %c0_i32 = arith.constant 0 : i32
    %1 = arith.cmpi eq, %c16_i32, %c0_i32 : i32
    %c1_i32 = arith.constant 1 : i32
    %2 = arith.select %1, %c1_i32, %c16_i32 : i32
    %3 = vector.broadcast %2 : i32 to vector<1x256xi32>
    %4 = arith.remsi %0, %3 : vector<1x256xi32>
    %c0_i32_0 = arith.constant 0 : i32
    %5 = vector.broadcast %c0_i32_0 : i32 to vector<1x256xi32>
    %6 = arith.cmpi ne, %4, %5 : vector<1x256xi32>
    %c0_i32_1 = arith.constant 0 : i32
    %7 = vector.broadcast %c0_i32_1 : i32 to vector<1x256xi32>
    %8 = arith.cmpi slt, %4, %7 : vector<1x256xi32>
    %c0_i32_2 = arith.constant 0 : i32
    %9 = arith.cmpi slt, %2, %c0_i32_2 : i32
    %10 = vector.broadcast %9 : i1 to vector<1x256xi1>
    %11 = vector.broadcast %10 : vector<1x256xi1> to vector<1x256xi1>
    %12 = arith.xori %8, %11 : vector<1x256xi1>
    %13 = arith.andi %12, %6 : vector<1x256xi1>
    %14 = vector.broadcast %2 : i32 to vector<1x256xi32>
    %15 = arith.addi %4, %14 : vector<1x256xi32>
    %16 = arith.select %13, %15, %4 : vector<1x256xi1>, vector<1x256xi32>
    %c0_i32_3 = arith.constant 0 : i32
    %17 = vector.broadcast %c0_i32_3 : i32 to vector<1x256xi32>
    %18 = arith.cmpi ne, %16, %17 : vector<1x256xi32>
    %c15_i32 = arith.constant 15 : i32
    %19 = vector.broadcast %c15_i32 : i32 to vector<1x256xi32>
    %20 = arith.cmpi ne, %16, %19 : vector<1x256xi32>
    %cst = arith.constant 0.000000e+00 : f32
    %21 = vector.broadcast %cst : f32 to vector<4x512xf32>
    %c36 = arith.constant 36 : index
    %c0 = arith.constant 0 : index
    %22 = vector.load %arg5[%c36, %c0] : memref<40x512xf32, #tpu.memory_space<vmem>>, vector<4x512xf32>
    tpu.vector_store %arg5[%c36, %c0], %21 {strides = array<i32>} : memref<40x512xf32, #tpu.memory_space<vmem>>, vector<4x512xf32>,
    %c0_4 = arith.constant 0 : index
    %c0_5 = arith.constant 0 : index
    %c0_6 = arith.constant 0 : index
    %23 = vector.load %arg1[%c0_4, %c0_5, %c0_6] : memref<2x4x290xf32, #tpu.memory_space<vmem>>, vector<1x4x256xf32>
    %24 = vector.shape_cast %23 : vector<1x4x256xf32> to vector<4x256xf32>
    %cst_7 = arith.constant 0.000000e+00 : f32
    %25 = vector.shape_cast %18 : vector<1x256xi1> to vector<1x256xi1>
    %26 = vector.broadcast %25 : vector<1x256xi1> to vector<4x256xi1>
    %27 = vector.broadcast %cst_7 : f32 to vector<4x256xf32>
    %28 = arith.select %26, %24, %27 : vector<4x256xi1>, vector<4x256xf32>
    %c0_8 = arith.constant 0 : index
    %c0_9 = arith.constant 0 : index
    %29 = vector.load %arg5[%c0_8, %c0_9] : memref<40x512xf32, #tpu.memory_space<vmem>>, vector<4x256xf32>
    tpu.vector_store %arg5[%c0_8, %c0_9], %28 {strides = array<i32>} : memref<40x512xf32, #tpu.memory_space<vmem>>, vector<4x256xf32>,
    %c0_10 = arith.constant 0 : index
    %c0_11 = arith.constant 0 : index
    %c1 = arith.constant 1 : index
    %30 = vector.load %arg1[%c0_10, %c0_11, %c1] : memref<2x4x290xf32, #tpu.memory_space<vmem>>, vector<1x4x256xf32>
    %31 = vector.shape_cast %30 : vector<1x4x256xf32> to vector<4x256xf32>
    %c4 = arith.constant 4 : index
    %c0_12 = arith.constant 0 : index
    %32 = vector.load %arg5[%c4, %c0_12] : memref<40x512xf32, #tpu.memory_space<vmem>>, vector<4x256xf32>
    tpu.vector_store %arg5[%c4, %c0_12], %31 {strides = array<i32>} : memref<40x512xf32, #tpu.memory_space<vmem>>, vector<4x256xf32>,
    %c0_13 = arith.constant 0 : index
    %c0_14 = arith.constant 0 : index
    %c2 = arith.constant 2 : index
    %33 = vector.load %arg1[%c0_13, %c0_14, %c2] : memref<2x4x290xf32, #tpu.memory_space<vmem>>, vector<1x4x256xf32>
    %34 = vector.shape_cast %33 : vector<1x4x256xf32> to vector<4x256xf32>
    %cst_15 = arith.constant 0.000000e+00 : f32
    %35 = vector.shape_cast %20 : vector<1x256xi1> to vector<1x256xi1>
    %36 = vector.broadcast %35 : vector<1x256xi1> to vector<4x256xi1>
    %37 = vector.broadcast %cst_15 : f32 to vector<4x256xf32>
    %38 = arith.select %36, %34, %37 : vector<4x256xi1>, vector<4x256xf32>
    %c8 = arith.constant 8 : index
    %c0_16 = arith.constant 0 : index
    %39 = vector.load %arg5[%c8, %c0_16] : memref<40x512xf32, #tpu.memory_space<vmem>>, vector<4x256xf32>
    tpu.vector_store %arg5[%c8, %c0_16], %38 {strides = array<i32>} : memref<40x512xf32, #tpu.memory_space<vmem>>, vector<4x256xf32>,
    %c0_17 = arith.constant 0 : index
    %c0_18 = arith.constant 0 : index
    %c16 = arith.constant 16 : index
    %40 = vector.load %arg1[%c0_17, %c0_18, %c16] : memref<2x4x290xf32, #tpu.memory_space<vmem>>, vector<1x4x256xf32>
    %41 = vector.shape_cast %40 : vector<1x4x256xf32> to vector<4x256xf32>
    %cst_19 = arith.constant 0.000000e+00 : f32
    %42 = vector.shape_cast %18 : vector<1x256xi1> to vector<1x256xi1>
    %43 = vector.broadcast %42 : vector<1x256xi1> to vector<4x256xi1>
    %44 = vector.broadcast %cst_19 : f32 to vector<4x256xf32>
    %45 = arith.select %43, %41, %44 : vector<4x256xi1>, vector<4x256xf32>
    %c12 = arith.constant 12 : index
    %c0_20 = arith.constant 0 : index
    %46 = vector.load %arg5[%c12, %c0_20] : memref<40x512xf32, #tpu.memory_space<vmem>>, vector<4x256xf32>
    tpu.vector_store %arg5[%c12, %c0_20], %45 {strides = array<i32>} : memref<40x512xf32, #tpu.memory_space<vmem>>, vector<4x256xf32>,
    %c0_21 = arith.constant 0 : index
    %c0_22 = arith.constant 0 : index
    %c17 = arith.constant 17 : index
    %47 = vector.load %arg1[%c0_21, %c0_22, %c17] : memref<2x4x290xf32, #tpu.memory_space<vmem>>, vector<1x4x256xf32>
    %48 = vector.shape_cast %47 : vector<1x4x256xf32> to vector<4x256xf32>
    %c16_23 = arith.constant 16 : index
    %c0_24 = arith.constant 0 : index
    %49 = vector.load %arg5[%c16_23, %c0_24] : memref<40x512xf32, #tpu.memory_space<vmem>>, vector<4x256xf32>
    tpu.vector_store %arg5[%c16_23, %c0_24], %48 {strides = array<i32>} : memref<40x512xf32, #tpu.memory_space<vmem>>, vector<4x256xf32>,
    %c0_25 = arith.constant 0 : index
    %c0_26 = arith.constant 0 : index
    %c18 = arith.constant 18 : index
    %50 = vector.load %arg1[%c0_25, %c0_26, %c18] : memref<2x4x290xf32, #tpu.memory_space<vmem>>, vector<1x4x256xf32>
    %51 = vector.shape_cast %50 : vector<1x4x256xf32> to vector<4x256xf32>
    %cst_27 = arith.constant 0.000000e+00 : f32
    %52 = vector.shape_cast %20 : vector<1x256xi1> to vector<1x256xi1>
    %53 = vector.broadcast %52 : vector<1x256xi1> to vector<4x256xi1>
    %54 = vector.broadcast %cst_27 : f32 to vector<4x256xf32>
    %55 = arith.select %53, %51, %54 : vector<4x256xi1>, vector<4x256xf32>
    %c20 = arith.constant 20 : index
    %c0_28 = arith.constant 0 : index
    %56 = vector.load %arg5[%c20, %c0_28] : memref<40x512xf32, #tpu.memory_space<vmem>>, vector<4x256xf32>
    tpu.vector_store %arg5[%c20, %c0_28], %55 {strides = array<i32>} : memref<40x512xf32, #tpu.memory_space<vmem>>, vector<4x256xf32>,
    %c0_29 = arith.constant 0 : index
    %c0_30 = arith.constant 0 : index
    %c32 = arith.constant 32 : index
    %57 = vector.load %arg1[%c0_29, %c0_30, %c32] : memref<2x4x290xf32, #tpu.memory_space<vmem>>, vector<1x4x256xf32>
    %58 = vector.shape_cast %57 : vector<1x4x256xf32> to vector<4x256xf32>
    %cst_31 = arith.constant 0.000000e+00 : f32
    %59 = vector.shape_cast %18 : vector<1x256xi1> to vector<1x256xi1>
    %60 = vector.broadcast %59 : vector<1x256xi1> to vector<4x256xi1>
    %61 = vector.broadcast %cst_31 : f32 to vector<4x256xf32>
    %62 = arith.select %60, %58, %61 : vector<4x256xi1>, vector<4x256xf32>
    %c24 = arith.constant 24 : index
    %c0_32 = arith.constant 0 : index
    %63 = vector.load %arg5[%c24, %c0_32] : memref<40x512xf32, #tpu.memory_space<vmem>>, vector<4x256xf32>
    tpu.vector_store %arg5[%c24, %c0_32], %62 {strides = array<i32>} : memref<40x512xf32, #tpu.memory_space<vmem>>, vector<4x256xf32>,
    %c0_33 = arith.constant 0 : index
    %c0_34 = arith.constant 0 : index
    %c33 = arith.constant 33 : index
    %64 = vector.load %arg1[%c0_33, %c0_34, %c33] : memref<2x4x290xf32, #tpu.memory_space<vmem>>, vector<1x4x256xf32>
    %65 = vector.shape_cast %64 : vector<1x4x256xf32> to vector<4x256xf32>
    %c28 = arith.constant 28 : index
    %c0_35 = arith.constant 0 : index
    %66 = vector.load %arg5[%c28, %c0_35] : memref<40x512xf32, #tpu.memory_space<vmem>>, vector<4x256xf32>
    tpu.vector_store %arg5[%c28, %c0_35], %65 {strides = array<i32>} : memref<40x512xf32, #tpu.memory_space<vmem>>, vector<4x256xf32>,
    %c0_36 = arith.constant 0 : index
    %c0_37 = arith.constant 0 : index
    %c34 = arith.constant 34 : index
    %67 = vector.load %arg1[%c0_36, %c0_37, %c34] : memref<2x4x290xf32, #tpu.memory_space<vmem>>, vector<1x4x256xf32>
    %68 = vector.shape_cast %67 : vector<1x4x256xf32> to vector<4x256xf32>
    %cst_38 = arith.constant 0.000000e+00 : f32
    %69 = vector.shape_cast %20 : vector<1x256xi1> to vector<1x256xi1>
    %70 = vector.broadcast %69 : vector<1x256xi1> to vector<4x256xi1>
    %71 = vector.broadcast %cst_38 : f32 to vector<4x256xf32>
    %72 = arith.select %70, %68, %71 : vector<4x256xi1>, vector<4x256xf32>
    %c32_39 = arith.constant 32 : index
    %c0_40 = arith.constant 0 : index
    %73 = vector.load %arg5[%c32_39, %c0_40] : memref<40x512xf32, #tpu.memory_space<vmem>>, vector<4x256xf32>
    tpu.vector_store %arg5[%c32_39, %c0_40], %72 {strides = array<i32>} : memref<40x512xf32, #tpu.memory_space<vmem>>, vector<4x256xf32>,
    %c1_41 = arith.constant 1 : index
    %c0_42 = arith.constant 0 : index
    %c0_43 = arith.constant 0 : index
    %74 = vector.load %arg1[%c1_41, %c0_42, %c0_43] : memref<2x4x290xf32, #tpu.memory_space<vmem>>, vector<1x4x256xf32>
    %75 = vector.shape_cast %74 : vector<1x4x256xf32> to vector<4x256xf32>
    %cst_44 = arith.constant 0.000000e+00 : f32
    %76 = vector.shape_cast %18 : vector<1x256xi1> to vector<1x256xi1>
    %77 = vector.broadcast %76 : vector<1x256xi1> to vector<4x256xi1>
    %78 = vector.broadcast %cst_44 : f32 to vector<4x256xf32>
    %79 = arith.select %77, %75, %78 : vector<4x256xi1>, vector<4x256xf32>
    %c0_45 = arith.constant 0 : index
    %c256 = arith.constant 256 : index
    %80 = vector.load %arg5[%c0_45, %c256] : memref<40x512xf32, #tpu.memory_space<vmem>>, vector<4x256xf32>
    tpu.vector_store %arg5[%c0_45, %c256], %79 {strides = array<i32>} : memref<40x512xf32, #tpu.memory_space<vmem>>, vector<4x256xf32>,
    %c1_46 = arith.constant 1 : index
    %c0_47 = arith.constant 0 : index
    %c1_48 = arith.constant 1 : index
    %81 = vector.load %arg1[%c1_46, %c0_47, %c1_48] : memref<2x4x290xf32, #tpu.memory_space<vmem>>, vector<1x4x256xf32>
    %82 = vector.shape_cast %81 : vector<1x4x256xf32> to vector<4x256xf32>
    %c4_49 = arith.constant 4 : index
    %c256_50 = arith.constant 256 : index
    %83 = vector.load %arg5[%c4_49, %c256_50] : memref<40x512xf32, #tpu.memory_space<vmem>>, vector<4x256xf32>
    tpu.vector_store %arg5[%c4_49, %c256_50], %82 {strides = array<i32>} : memref<40x512xf32, #tpu.memory_space<vmem>>, vector<4x256xf32>,
    %c1_51 = arith.constant 1 : index
    %c0_52 = arith.constant 0 : index
    %c2_53 = arith.constant 2 : index
    %84 = vector.load %arg1[%c1_51, %c0_52, %c2_53] : memref<2x4x290xf32, #tpu.memory_space<vmem>>, vector<1x4x256xf32>
    %85 = vector.shape_cast %84 : vector<1x4x256xf32> to vector<4x256xf32>
    %cst_54 = arith.constant 0.000000e+00 : f32
    %86 = vector.shape_cast %20 : vector<1x256xi1> to vector<1x256xi1>
    %87 = vector.broadcast %86 : vector<1x256xi1> to vector<4x256xi1>
    %88 = vector.broadcast %cst_54 : f32 to vector<4x256xf32>
    %89 = arith.select %87, %85, %88 : vector<4x256xi1>, vector<4x256xf32>
    %c8_55 = arith.constant 8 : index
    %c256_56 = arith.constant 256 : index
    %90 = vector.load %arg5[%c8_55, %c256_56] : memref<40x512xf32, #tpu.memory_space<vmem>>, vector<4x256xf32>
    tpu.vector_store %arg5[%c8_55, %c256_56], %89 {strides = array<i32>} : memref<40x512xf32, #tpu.memory_space<vmem>>, vector<4x256xf32>,
    %c1_57 = arith.constant 1 : index
    %c0_58 = arith.constant 0 : index
    %c16_59 = arith.constant 16 : index
    %91 = vector.load %arg1[%c1_57, %c0_58, %c16_59] : memref<2x4x290xf32, #tpu.memory_space<vmem>>, vector<1x4x256xf32>
    %92 = vector.shape_cast %91 : vector<1x4x256xf32> to vector<4x256xf32>
    %cst_60 = arith.constant 0.000000e+00 : f32
    %93 = vector.shape_cast %18 : vector<1x256xi1> to vector<1x256xi1>
    %94 = vector.broadcast %93 : vector<1x256xi1> to vector<4x256xi1>
    %95 = vector.broadcast %cst_60 : f32 to vector<4x256xf32>
    %96 = arith.select %94, %92, %95 : vector<4x256xi1>, vector<4x256xf32>
    %c12_61 = arith.constant 12 : index
    %c256_62 = arith.constant 256 : index
    %97 = vector.load %arg5[%c12_61, %c256_62] : memref<40x512xf32, #tpu.memory_space<vmem>>, vector<4x256xf32>
    tpu.vector_store %arg5[%c12_61, %c256_62], %96 {strides = array<i32>} : memref<40x512xf32, #tpu.memory_space<vmem>>, vector<4x256xf32>,
    %c1_63 = arith.constant 1 : index
    %c0_64 = arith.constant 0 : index
    %c17_65 = arith.constant 17 : index
    %98 = vector.load %arg1[%c1_63, %c0_64, %c17_65] : memref<2x4x290xf32, #tpu.memory_space<vmem>>, vector<1x4x256xf32>
    %99 = vector.shape_cast %98 : vector<1x4x256xf32> to vector<4x256xf32>
    %c16_66 = arith.constant 16 : index
    %c256_67 = arith.constant 256 : index
    %100 = vector.load %arg5[%c16_66, %c256_67] : memref<40x512xf32, #tpu.memory_space<vmem>>, vector<4x256xf32>
    tpu.vector_store %arg5[%c16_66, %c256_67], %99 {strides = array<i32>} : memref<40x512xf32, #tpu.memory_space<vmem>>, vector<4x256xf32>,
    %c1_68 = arith.constant 1 : index
    %c0_69 = arith.constant 0 : index
    %c18_70 = arith.constant 18 : index
    %101 = vector.load %arg1[%c1_68, %c0_69, %c18_70] : memref<2x4x290xf32, #tpu.memory_space<vmem>>, vector<1x4x256xf32>
    %102 = vector.shape_cast %101 : vector<1x4x256xf32> to vector<4x256xf32>
    %cst_71 = arith.constant 0.000000e+00 : f32
    %103 = vector.shape_cast %20 : vector<1x256xi1> to vector<1x256xi1>
    %104 = vector.broadcast %103 : vector<1x256xi1> to vector<4x256xi1>
    %105 = vector.broadcast %cst_71 : f32 to vector<4x256xf32>
    %106 = arith.select %104, %102, %105 : vector<4x256xi1>, vector<4x256xf32>
    %c20_72 = arith.constant 20 : index
    %c256_73 = arith.constant 256 : index
    %107 = vector.load %arg5[%c20_72, %c256_73] : memref<40x512xf32, #tpu.memory_space<vmem>>, vector<4x256xf32>
    tpu.vector_store %arg5[%c20_72, %c256_73], %106 {strides = array<i32>} : memref<40x512xf32, #tpu.memory_space<vmem>>, vector<4x256xf32>,
    %c1_74 = arith.constant 1 : index
    %c0_75 = arith.constant 0 : index
    %c32_76 = arith.constant 32 : index
    %108 = vector.load %arg1[%c1_74, %c0_75, %c32_76] : memref<2x4x290xf32, #tpu.memory_space<vmem>>, vector<1x4x256xf32>
    %109 = vector.shape_cast %108 : vector<1x4x256xf32> to vector<4x256xf32>
    %cst_77 = arith.constant 0.000000e+00 : f32
    %110 = vector.shape_cast %18 : vector<1x256xi1> to vector<1x256xi1>
    %111 = vector.broadcast %110 : vector<1x256xi1> to vector<4x256xi1>
    %112 = vector.broadcast %cst_77 : f32 to vector<4x256xf32>
    %113 = arith.select %111, %109, %112 : vector<4x256xi1>, vector<4x256xf32>
    %c24_78 = arith.constant 24 : index
    %c256_79 = arith.constant 256 : index
    %114 = vector.load %arg5[%c24_78, %c256_79] : memref<40x512xf32, #tpu.memory_space<vmem>>, vector<4x256xf32>
    tpu.vector_store %arg5[%c24_78, %c256_79], %113 {strides = array<i32>} : memref<40x512xf32, #tpu.memory_space<vmem>>, vector<4x256xf32>,
    %c1_80 = arith.constant 1 : index
    %c0_81 = arith.constant 0 : index
    %c33_82 = arith.constant 33 : index
    %115 = vector.load %arg1[%c1_80, %c0_81, %c33_82] : memref<2x4x290xf32, #tpu.memory_space<vmem>>, vector<1x4x256xf32>
    %116 = vector.shape_cast %115 : vector<1x4x256xf32> to vector<4x256xf32>
    %c28_83 = arith.constant 28 : index
    %c256_84 = arith.constant 256 : index
    %117 = vector.load %arg5[%c28_83, %c256_84] : memref<40x512xf32, #tpu.memory_space<vmem>>, vector<4x256xf32>
    tpu.vector_store %arg5[%c28_83, %c256_84], %116 {strides = array<i32>} : memref<40x512xf32, #tpu.memory_space<vmem>>, vector<4x256xf32>,
    %c1_85 = arith.constant 1 : index
    %c0_86 = arith.constant 0 : index
    %c34_87 = arith.constant 34 : index
    %118 = vector.load %arg1[%c1_85, %c0_86, %c34_87] : memref<2x4x290xf32, #tpu.memory_space<vmem>>, vector<1x4x256xf32>
    %119 = vector.shape_cast %118 : vector<1x4x256xf32> to vector<4x256xf32>
    %cst_88 = arith.constant 0.000000e+00 : f32
    %120 = vector.shape_cast %20 : vector<1x256xi1> to vector<1x256xi1>
    %121 = vector.broadcast %120 : vector<1x256xi1> to vector<4x256xi1>
    %122 = vector.broadcast %cst_88 : f32 to vector<4x256xf32>
    %123 = arith.select %121, %119, %122 : vector<4x256xi1>, vector<4x256xf32>
    %c32_89 = arith.constant 32 : index
    %c256_90 = arith.constant 256 : index
    %124 = vector.load %arg5[%c32_89, %c256_90] : memref<40x512xf32, #tpu.memory_space<vmem>>, vector<4x256xf32>
    tpu.vector_store %arg5[%c32_89, %c256_90], %123 {strides = array<i32>} : memref<40x512xf32, #tpu.memory_space<vmem>>, vector<4x256xf32>,
    %c0_91 = arith.constant 0 : index
    %c0_92 = arith.constant 0 : index
    %125 = vector.load %arg2[%c0_91, %c0_92] : memref<8x40xf32, #tpu.memory_space<vmem>>, vector<8x40xf32>
    %c0_93 = arith.constant 0 : index
    %c0_94 = arith.constant 0 : index
    %126 = vector.load %arg5[%c0_93, %c0_94] : memref<40x512xf32, #tpu.memory_space<vmem>>, vector<40x512xf32>
    %cst_95 = arith.constant dense<0.000000e+00> : vector<8x512xf32>
    %127 = tpu.matmul %125, %126, %cst_95 {dimension_numbers = #tpu.dot_dimension_numbers<[1], [0], [0], [1], [0, 0, 1, 1], [], []>, precision = #tpu.contract_precision<fp32>} : vector<8x40xf32>, vector<40x512xf32>, vector<8x512xf32> -> vector<8x512xf32>
    %c0_96 = arith.constant 0 : index
    %c0_97 = arith.constant 0 : index
    %128 = vector.load %arg3[%c0_96, %c0_97] : memref<8x1xf32, #tpu.memory_space<vmem>>, vector<8x1xf32>
    %129 = vector.extract_strided_slice %127 {offsets = [0, 0], sizes = [8, 256], strides = [1, 1]} : vector<8x512xf32> to vector<8x256xf32>
    %130 = vector.broadcast %128 : vector<8x1xf32> to vector<8x256xf32>
    %131 = arith.addf %129, %130 : vector<8x256xf32>
    %cst_98 = arith.constant 0.000000e+00 : f32
    %132 = vector.broadcast %cst_98 : f32 to vector<8x256xf32>
    %133 = arith.maximumf %131, %132 : vector<8x256xf32>
    %c0_99 = arith.constant 0 : index
    %c0_100 = arith.constant 0 : index
    %c0_101 = arith.constant 0 : index
    %134 = vector.load %arg4[%c0_99, %c0_100, %c0_101] : memref<2x8x256xf32, #tpu.memory_space<vmem>>, vector<1x8x256xf32>
    %135 = vector.shape_cast %134 : vector<1x8x256xf32> to vector<8x256xf32>
    %136 = vector.shape_cast %133 : vector<8x256xf32> to vector<1x8x256xf32>
    tpu.vector_store %arg4[%c0_99, %c0_100, %c0_101], %136 {strides = array<i32>} : memref<2x8x256xf32, #tpu.memory_space<vmem>>, vector<1x8x256xf32>,
    %137 = vector.extract_strided_slice %127 {offsets = [0, 256], sizes = [8, 256], strides = [1, 1]} : vector<8x512xf32> to vector<8x256xf32>
    %138 = vector.broadcast %128 : vector<8x1xf32> to vector<8x256xf32>
    %139 = arith.addf %137, %138 : vector<8x256xf32>
    %cst_102 = arith.constant 0.000000e+00 : f32
    %140 = vector.broadcast %cst_102 : f32 to vector<8x256xf32>
    %141 = arith.maximumf %139, %140 : vector<8x256xf32>
    %c1_103 = arith.constant 1 : index
    %c0_104 = arith.constant 0 : index
    %c0_105 = arith.constant 0 : index
    %142 = vector.load %arg4[%c1_103, %c0_104, %c0_105] : memref<2x8x256xf32, #tpu.memory_space<vmem>>, vector<1x8x256xf32>
    %143 = vector.shape_cast %142 : vector<1x8x256xf32> to vector<8x256xf32>
    %144 = vector.shape_cast %141 : vector<8x256xf32> to vector<1x8x256xf32>
    tpu.vector_store %arg4[%c1_103, %c0_104, %c0_105], %144 {strides = array<i32>} : memref<2x8x256xf32, #tpu.memory_space<vmem>>, vector<1x8x256xf32>,
    return
  }
  func.func @transform_0(%arg0: i32) -> (i32, i32, i32) {
    %c0_i32 = arith.constant 0 : i32
    %c0_i32_0 = arith.constant 0 : i32
    %c0_i32_1 = arith.constant 0 : i32
    return %arg0, %c0_i32, %c0_i32_0 : i32, i32, i32
  }
  func.func @transform_1(%arg0: i32) -> (i32, i32) {
    %c0_i32 = arith.constant 0 : i32
    %c0_i32_0 = arith.constant 0 : i32
    %c0_i32_1 = arith.constant 0 : i32
    return %c0_i32, %c0_i32_0 : i32, i32
  }
  func.func @transform_2(%arg0: i32) -> (i32, i32) {
    %c0_i32 = arith.constant 0 : i32
    %c0_i32_0 = arith.constant 0 : i32
    %c0_i32_1 = arith.constant 0 : i32
    return %c0_i32, %c0_i32_0 : i32, i32
  }
  func.func @transform_3(%arg0: i32) -> (i32, i32, i32) {
    %c0_i32 = arith.constant 0 : i32
    %c0_i32_0 = arith.constant 0 : i32
    %c0_i32_1 = arith.constant 0 : i32
    return %arg0, %c0_i32, %c0_i32_0 : i32, i32, i32
  }
}

</mosaic_0001>

<bundles_post_ra>
// kernel: conv2d_relu_pallas.1
= control target key start
LH: loop header
LB: loop body
LE: loop exit
PB: predicated region body
PF: predicated region fallthrough
CT: control target
= control target key end

     0   :  { %v14_v0 = vlaneseq  ;;  %s1742_s18 = smov 112   ;;  %s1743_s23 = smov 126   ;;  %v1749_v31 = vmov 0.0   ;;  %vm115_vm2 = vcmask 916480   ;;  %vm95_vm3 = vcmask 1031168   ;;  %s2332_s0 = inlined_call_operand.vmem [shape: f32[2,4,290], index: 0, kind: input, shape index: {}]   ;;  %s2333_s2 = inlined_call_operand.vmem [shape: f32[8,1], index: 2, kind: input, shape index: {}]   ;;  %s2334_s1 = inlined_call_operand.vmem [shape: f32[8,40], index: 1, kind: input, shape index: {}]   ;;  %s2335_s3 = inlined_call_operand.vmem [shape: f32[2,8,256], index: 3, kind: output, shape index: {}]  }
   0x1   :  { %v1594_v1 = vld [vmem:[%s2332_s0 + $0x14] sm:$0xf]  ;;  %v105_v2 = vld [vmem:[%s2332_s0 + $0x8] sm:$0xf]  ;;  %v1781_v3 = vld [vmem:[%s2332_s0 + $0xc] sm:$0xff]  ;;  %s1744_s28 = smov 127   ;;  %501 = vmatprep.mubr.f32.mxu0 %v1749_v31  ;;  %1070 = vmatprep.mubr.f32.mxu1 %v1749_v31 }
   0x2   :  { %288 = vrot.lane.b32.xlu1 %v1594_v1, %s1742_s18  ;;  %113 = vrot.lane.b32.xlu0 %v105_v2, %s1742_s18  ;;  %v1785_v4 = vcombine.high %v1781_v3, %v1781_v3  ;;  %v1790_v5 = vld [vmem:[%s2332_s0] sm:$0xff]  ;;  %v1796_v7 = vand.u32 127, %v14_v0  ;;  %v81_v11 = vld [vmem:[%s2332_s0 + $0x8] sm:$0xf]  ;;  %v246_v22 = vcombine.low %v1781_v3, %v1781_v3  ;;  %s1745_s4 = smov 110   ;;  %s1746_s11 = smov 96  }
   0x3   :  { %v1794_v6 = vcombine.high %v1790_v5, %v1790_v5  ;;  %v1592_v18 = vld [vmem:[%s2332_s0 + $0x14] sm:$0xf]  ;;  %v1736_v19 = vld [vmem:[%s2332_s0 + $0x8] ss:$0 sps:$4 sm:$0xff]   ;;  %v65_v21 = vcombine.low %v1790_v5, %v1790_v5  ;;  %s1747_s16 = smov 111   ;;  %s1748_s17 = smov 95  }
   0x4   :  { %v1801_v8 = vadd.s32 128, %v1796_v7  ;;  %v21_v9 = vand.u32 15, %v1796_v7  ;;  %v1739_v20 = vld [vmem:[%s2332_s0 + $0x14] ss:$0 sps:$4 sm:$0xff]   ;;  %v149_v23 = vld [vmem:[%s2332_s0 + $0x8] sm:$0xf] }
   0x5   :  { %v1598_v24 = vld [vmem:[%s2332_s0 + $0x14] sm:$0xf]  ;;  %v175_v25 = vld [vmem:[%s2332_s0 + $0x8] sm:$0xf]  ;;  %46 = vst [vmem:[#allocation2 + $0x88] sm:$0xf0] %v1749_v31 }
   0x6   :  { %286 = vrot.lane.b32.xlu1 %v1785_v4, %s1742_s18  ;;  %111 = vrot.lane.b32.xlu0 %v1794_v6, %s1742_s18  ;;  %v28_v10 = vand.u32 15, %v1801_v8  ;;  %vm1812_vm0 = vcmp.ne.s32.totalorder %v21_v9, 0  ;;  %v1600_v26 = vld [vmem:[%s2332_s0 + $0x14] sm:$0xf]  ;;  %v131_v27 = vld [vmem:[%s2332_s0 + $0x8] sm:$0xf] }
   0x7   :  { %v57_v14 = vsel %vm1812_vm0, %v1790_v5, 0.0  ;;  %v238_v15 = vsel %vm1812_vm0, %v1781_v3, 0.0  ;;  %v1740_v28 = vld [vmem:[%s2332_s0 + $0x8] ss:$0 sps:$4 sm:$0xff]   ;;  %v1596_v29 = vld [vmem:[%s2332_s0 + $0x14] sm:$0xf] }
   0x8   :  { %vm1818_vm1 = vcmp.ne.s32.totalorder %v28_v10, 0  ;;  %59 = vst [vmem:[#allocation2] sm:$0xf] %v57_v14  ;;  %240 = vst [vmem:[#allocation2 + $0x10] sm:$0xf] %v238_v15  ;;  %s1750_s26 = smov 94  }
   0x9   :  { %v58_v16 = vsel %vm1818_vm1, %v1794_v6, 0.0  ;;  %v239_v17 = vsel %vm1818_vm1, %v1785_v4, 0.0  ;;  %v1741_v30 = vld [vmem:[%s2332_s0 + $0x14] ss:$0 sps:$4 sm:$0xff]   ;;  %45 = vst [vmem:[#allocation2 + $0x80] sm:$0xf0] %v1749_v31 }
   0xa   :  { %284 = vrot.lane.b32.xlu1 %v1781_v3, %s1742_s18  ;;  %109 = vrot.lane.b32.xlu0 %v1790_v5, %s1742_s18  ;;  %60 = vst [vmem:[#allocation2 + $0x8] sm:$0xf] %v58_v16  ;;  %241 = vst [vmem:[#allocation2 + $0x18] sm:$0xf] %v239_v17  ;;  %v214_v32 = vld [vmem:[%s2332_s0 + $0x8] sm:$0xf] }
   0xb   :  { %47 = vst [vmem:[#allocation2 + $0x90] sm:$0xf0] %v1749_v31  ;;  %48 = vst [vmem:[#allocation2 + $0x98] sm:$0xf0] %v1749_v31  ;;  %v1604_v33 = vld [vmem:[%s2332_s0 + $0x14] sm:$0xf] }
   0xc   :  { %vm1917_vm4 = vcmp.ne.s32.totalorder %v28_v10, 15  ;;  %vm73_vm5 = vcmask 1039360   ;;  %vm1930_vm6 = vcmp.ne.s32.totalorder %v21_v9, 15  ;;  %vm159_vm7 = vcmask 900096  }
   0xd   :  { %vm185_vm8 = vcmask 785408   ;;  %vm141_vm9 = vcmask 908288   ;;  %vm206_vm10 = vcmask 777216   ;;  %vm423_vm11 = vcmask 326656  }
   0xe   :  { %93 = vrot.lane.b32.xlu1 %v81_v11, %s1743_s23  ;;  %91 = vrot.lane.b32.xlu0 %v1794_v6, %s1743_s23  ;;  %vm224_vm12 = vcmask 769024  }
  0x12   :  { %269 = vrot.lane.b32.xlu1 %v1592_v18, %s1743_s23  ;;  %267 = vrot.lane.b32.xlu0 %v1785_v4, %s1743_s23 }
  0x16   :  { %71 = vrot.lane.b32.xlu1 %v1736_v19, %s1744_s28  ;;  %69 = vrot.lane.b32.xlu0 %v1790_v5, %s1744_s28 }
  0x1a   :  { %250 = vrot.lane.b32.xlu1 %v1781_v3, %s1744_s28  ;;  %89 = vrot.lane.b32.xlu0 %v1790_v5, %s1743_s23 }
  0x1e   :  { %265 = vrot.lane.b32.xlu1 %v1781_v3, %s1743_s23  ;;  %252 = vrot.lane.b32.xlu0 %v1739_v20, %s1744_s28 }
  0x22   :  { %155 = vrot.lane.b32.xlu1 %v1794_v6, %s1745_s4  ;;  %67 = vrot.lane.b32.xlu0 %v65_v21, %s1744_s28 }
  0x26   :  { %248 = vrot.lane.b32.xlu1 %v246_v22, %s1744_s28  ;;  %157 = vrot.lane.b32.xlu0 %v149_v23, %s1745_s4 }
  0x2a   :  { %330 = vrot.lane.b32.xlu1 %v1598_v24, %s1745_s4  ;;  %328 = vrot.lane.b32.xlu0 %v1785_v4, %s1745_s4 }
  0x2e   :  { %326 = vrot.lane.b32.xlu1 %v1781_v3, %s1745_s4  ;;  %153 = vrot.lane.b32.xlu0 %v1790_v5, %s1745_s4 }
  0x32   :  { %183 = vrot.lane.b32.xlu1 %v175_v25, %s1746_s11  ;;  %181 = vrot.lane.b32.xlu0 %v1794_v6, %s1746_s11 }
  0x36   :  { %355 = vrot.lane.b32.xlu1 %v1600_v26, %s1746_s11  ;;  %353 = vrot.lane.b32.xlu0 %v1785_v4, %s1746_s11 }
  0x3a   :  { %139 = vrot.lane.b32.xlu1 %v131_v27, %s1747_s16  ;;  %137 = vrot.lane.b32.xlu0 %v1794_v6, %s1747_s16  ;;  %v1751_v27 = vmov 0  }
  0x3b   :  { %1733 = vset.pattern.permute.xlu0 %v1751_v27 }
  0x3e   :  { %202 = vrot.lane.b32.xlu1 %v1790_v5, %s1748_s17  ;;  %179 = vrot.lane.b32.xlu0 %v1790_v5, %s1746_s11 }
  0x42   :  { %311 = vrot.lane.b32.xlu1 %v1785_v4, %s1747_s16  ;;  %204 = vrot.lane.b32.xlu0 %v1740_v28, %s1748_s17  ;;  %v1565_v28 = vld [vmem:[%s2333_s2] sm:$0xff] }
  0x46   :  { %351 = vrot.lane.b32.xlu1 %v1781_v3, %s1746_s11  ;;  %313 = vrot.lane.b32.xlu0 %v1596_v29, %s1747_s16 }
  0x4a   :  { %375 = vrot.lane.b32.xlu1 %v1741_v30, %s1748_s17  ;;  %373 = vrot.lane.b32.xlu0 %v1781_v3, %s1748_s17 }
  0x4e   :  { %200 = vrot.lane.b32.xlu1 %v65_v21, %s1748_s17  ;;  %135 = vrot.lane.b32.xlu0 %v1790_v5, %s1747_s16 }
  0x52   :  { %371 = vrot.lane.b32.xlu1 %v246_v22, %s1748_s17  ;;  %309 = vrot.lane.b32.xlu0 %v1781_v3, %s1747_s16 }
  0x56   :  { %222 = vrot.lane.b32.xlu1 %v214_v32, %s1750_s26  ;;  %220 = vrot.lane.b32.xlu0 %v1794_v6, %s1750_s26 }
  0x5a   :  { %392 = vrot.lane.b32.xlu1 %v1604_v33, %s1750_s26  ;;  %390 = vrot.lane.b32.xlu0 %v1785_v4, %s1750_s26 }
  0x5e   :  { %388 = vrot.lane.b32.xlu1 %v1781_v3, %s1750_s26  ;;  %218 = vrot.lane.b32.xlu0 %v1790_v5, %s1750_s26 }
  0x62   :  { %1568 = vperm.xlu0 %1733, %v1565_v28  }
  0x74   :  { %v289_v34 = vpop.permute.xlu1 %288  ;;  %v114_v35 = vpop.permute.xlu0 %113 }
  0x78   :  { %v287_v36 = vpop.permute.xlu1 %286  ;;  %v112_v37 = vpop.permute.xlu0 %111 }
  0x79   :  { %v291_v38 = vsel %vm115_vm2, %v287_v36, %v289_v34  ;;  %v117_v39 = vsel %vm115_vm2, %v112_v37, %v114_v35 }
  0x7a   :  { %v295_v40 = vsel %vm1818_vm1, %v291_v38, 0.0  ;;  %v121_v41 = vsel %vm1818_vm1, %v117_v39, 0.0 }
  0x7b   :  { %v299_v42 = vrot.slane %v295_v40, 4  ;;  %v125_v43 = vrot.slane %v121_v41, 4 }
  0x7c   :  { %v285_v44 = vpop.permute.xlu1 %284  ;;  %v110_v45 = vpop.permute.xlu0 %109 }
  0x7d   :  { %303 = vst [vmem:[#allocation2 + $0x38] sm:$0xf0] %v299_v42  ;;  %129 = vst [vmem:[#allocation2 + $0x28] sm:$0xf0] %v125_v43  ;;  %v290_v46 = vsel %vm115_vm2, %v285_v44, %v287_v36  ;;  %v116_v47 = vsel %vm115_vm2, %v110_v45, %v112_v37 }
  0x7e   :  { %v294_v48 = vsel %vm1812_vm0, %v290_v46, 0.0  ;;  %v120_v49 = vsel %vm1812_vm0, %v116_v47, 0.0 }
  0x7f   :  { %v298_v50 = vrot.slane %v294_v48, 4  ;;  %v124_v51 = vrot.slane %v120_v49, 4 }
  0x80   :  { %v94_v53 = vpop.permute.xlu1 %93  ;;  %v92_v54 = vpop.permute.xlu0 %91 }
  0x81   :  { %302 = vst [vmem:[#allocation2 + $0x30] sm:$0xf0] %v298_v50  ;;  %128 = vst [vmem:[#allocation2 + $0x20] sm:$0xf0] %v124_v51  ;;  %v97_v55 = vsel %vm95_vm3, %v92_v54, %v94_v53 }
  0x82   :  { %v101_v56 = vsel %vm1917_vm4, %v97_v55, 0.0 }
  0x83   :  { %103 = vst [vmem:[#allocation2 + $0x28] sm:$0xf] %v101_v56 }
  0x84   :  { %v270_v57 = vpop.permute.xlu1 %269  ;;  %v268_v58 = vpop.permute.xlu0 %267 }
  0x85   :  { %v272_v59 = vsel %vm95_vm3, %v268_v58, %v270_v57 }
  0x86   :  { %v276_v60 = vsel %vm1917_vm4, %v272_v59, 0.0 }
  0x87   :  { %278 = vst [vmem:[#allocation2 + $0x38] sm:$0xf] %v276_v60 }
  0x88   :  { %v72_v61 = vpop.permute.xlu1 %71  ;;  %v70_v62 = vpop.permute.xlu0 %69 }
  0x89   :  { %v75_v63 = vsel %vm73_vm5, %v70_v62, %v72_v61 }
  0x8a   :  { %79 = vst [vmem:[#allocation2 + $0x8] sm:$0xf0] %v75_v63  ;;  %v408_v0 = vld [vmem:[#allocation2 + $0x28] sm:$0xff] }
  0x8b   :  { %v431_v2 = vand.u32 4294901760, %v408_v0 }
  0x8c   :  { %v251_v3 = vpop.permute.xlu1 %250  ;;  %v90_v4 = vpop.permute.xlu0 %89 }
  0x8d   :  { %v96_v5 = vsel %vm95_vm3, %v90_v4, %v92_v54  ;;  %v1935_v6 = vsub.f32 %v408_v0, %v431_v2 }
  0x8e   :  { %v100_v8 = vsel %vm1930_vm6, %v96_v5, 0.0  ;;  %v1950_v23 = vld [vmem:[#allocation2 + $0x38] sm:$0xff] }
  0x8f   :  { %102 = vst [vmem:[#allocation2 + $0x20] sm:$0xf] %v100_v8  ;;  %v527_v17 = vand.u32 4294901760, %v1935_v6  ;;  %v1000_v37 = vand.u32 4294901760, %v1950_v23 }
  0x90   :  { %v266_v10 = vpop.permute.xlu1 %265  ;;  %v253_v11 = vpop.permute.xlu0 %252 }
  0x91   :  { %v271_v14 = vsel %vm95_vm3, %v266_v10, %v268_v58  ;;  %v255_v7 = vsel %vm73_vm5, %v251_v3, %v253_v11  ;;  %v404_v9 = vld [vmem:[#allocation2 + $0x8] sm:$0xff]  ;;  %v528_v25 = vsub.f32 %v1935_v6, %v527_v17 }
  0x92   :  { %v275_v15 = vsel %vm1930_vm6, %v271_v14, 0.0  ;;  %259 = vst [vmem:[#allocation2 + $0x18] sm:$0xf0] %v255_v7  ;;  %v427_v16 = vand.u32 4294901760, %v404_v9 }
  0x93   :  { %277 = vst [vmem:[#allocation2 + $0x30] sm:$0xf] %v275_v15  ;;  %v529_v41 = vand.u32 4294901760, %v528_v25 }
  0x94   :  { %v156_v18 = vpop.permute.xlu1 %155  ;;  %v68_v19 = vpop.permute.xlu0 %67  ;;  %v1944_v20 = vpack.c.bf16 %v431_v2, %v427_v16  ;;  %v1946_v21 = vsub.f32 %v404_v9, %v427_v16 }
  0x95   :  { %v74_v22 = vsel %vm73_vm5, %v68_v19, %v70_v62 }
  0x96   :  { %78 = vst [vmem:[#allocation2] sm:$0xf0] %v74_v22  ;;  %1608 = vmatprep.subr.bf16.mxu0 %v1944_v20  ;;  %v515_v24 = vand.u32 4294901760, %v1946_v21  ;;  %v1623_v26 = vpack.c.bf16 %v1935_v6, %v1946_v21  ;;  %v1970_v43 = vld [vmem:[#allocation2 + $0x20] sm:$0xff] }
  0x97   :  { %v433_v53 = vand.u32 4294901760, %v1970_v43 }
  0x98   :  { %v249_v29 = vpop.permute.xlu1 %248  ;;  %v158_v30 = vpop.permute.xlu0 %157  ;;  %v516_v32 = vsub.f32 %v1946_v21, %v515_v24  ;;  %v1960_v33 = vpack.c.bf16 %v527_v17, %v515_v24 }
  0x99   :  { %v254_v34 = vsel %vm73_vm5, %v249_v29, %v251_v3  ;;  %v161_v35 = vsel %vm159_vm7, %v156_v18, %v158_v30  ;;  %v1964_v36 = vld [vmem:[#allocation2 + $0x18] sm:$0xff] }
  0x9a   :  { %258 = vst [vmem:[#allocation2 + $0x10] sm:$0xf0] %v254_v34  ;;  %v165_v38 = vsel %vm1917_vm4, %v161_v35, 0.0  ;;  %v996_v39 = vand.u32 4294901760, %v1964_v36  ;;  %v517_v40 = vand.u32 4294901760, %v516_v32  ;;  %v1988_v55 = vld [vmem:[#allocation2 + $0x30] sm:$0xff] }
  0x9b   :  { %v169_v42 = vrot.slane %v165_v38, 4  ;;  %v1002_v2 = vand.u32 4294901760, %v1988_v55 }
  0x9c   :  { %v331_v44 = vpop.permute.xlu1 %330  ;;  %v329_v45 = vpop.permute.xlu0 %328  ;;  %v1976_v46 = vpack.c.bf16 %v1000_v37, %v996_v39  ;;  %v1978_v47 = vpack.c.bf16 %v529_v41, %v517_v40  ;;  %v402_v41 = vld [vmem:[%s2334_s1] sm:$0xff] }
  0x9d   :  { %173 = vst [vmem:[#allocation2 + $0x48] sm:$0xf0] %v169_v42  ;;  %v333_v48 = vsel %vm159_vm7, %v329_v45, %v331_v44  ;;  %v1981_v49 = vld [vmem:[#allocation2] sm:$0xff]  ;;  %v425_v12 = vsel %vm423_vm11, %v402_v41, 0 }
  0x9e   :  { %v337_v50 = vsel %vm1917_vm4, %v333_v48, 0.0  ;;  %1656 = vmatprep.subr.bf16.mxu1 %v1976_v46  ;;  %v429_v51 = vand.u32 4294901760, %v1981_v49 }
  0x9f   :  { %v341_v54 = vrot.slane %v337_v50, 4 }
  0xa0   :  { %v327_v56 = vpop.permute.xlu1 %326  ;;  %v154_v57 = vpop.permute.xlu0 %153  ;;  %v1994_v58 = vpack.c.bf16 %v433_v53, %v429_v51 }
  0xa1   :  { %345 = vst [vmem:[#allocation2 + $0x58] sm:$0xf0] %v341_v54  ;;  %v332_v59 = vsel %vm159_vm7, %v327_v56, %v329_v45  ;;  %v160_v60 = vsel %vm159_vm7, %v154_v57, %v156_v18  ;;  %v1998_v61 = vld [vmem:[#allocation2 + $0x10] sm:$0xff] }
  0xa2   :  { %v336_v62 = vsel %vm1930_vm6, %v332_v59, 0.0  ;;  %v164_v63 = vsel %vm1930_vm6, %v160_v60, 0.0  ;;  %1610 = vmatpush1.bf16.msra.mxu0 %v1994_v58  ;;  %v998_v0 = vand.u32 4294901760, %v1998_v61 }
  0xa3   :  { %v340_v3 = vrot.slane %v336_v62, 4  ;;  %v168_v4 = vrot.slane %v164_v63, 4  ;;  %v2040_v63 = vand.u32 4294901760, %v425_v12 }
  0xa4   :  { %v184_v5 = vpop.permute.xlu1 %183  ;;  %v182_v8 = vpop.permute.xlu0 %181  ;;  %v2011_v10 = vpack.c.bf16 %v1002_v2, %v998_v0 }
  0xa5   :  { %344 = vst [vmem:[#allocation2 + $0x50] sm:$0xf0] %v340_v3  ;;  %172 = vst [vmem:[#allocation2 + $0x40] sm:$0xf0] %v168_v4  ;;  %v187_v11 = vsel %vm185_vm8, %v182_v8, %v184_v5 }
  0xa6   :  { %v191_v14 = vsel %vm1818_vm1, %v187_v11, 0.0  ;;  %1658 = vmatpush1.bf16.msra.mxu1 %v2011_v10 }
  0xa7   :  { %193 = vst [vmem:[#allocation2 + $0x68] sm:$0xf] %v191_v14 }
  0xa8   :  { %v356_v7 = vpop.permute.xlu1 %355  ;;  %v354_v9 = vpop.permute.xlu0 %353 }
  0xa9   :  { %v358_v15 = vsel %vm185_vm8, %v354_v9, %v356_v7 }
  0xaa   :  { %v362_v16 = vsel %vm1818_vm1, %v358_v15, 0.0 }
  0xab   :  { %364 = vst [vmem:[#allocation2 + $0x78] sm:$0xf] %v362_v16 }
  0xac   :  { %v140_v17 = vpop.permute.xlu1 %139  ;;  %v138_v18 = vpop.permute.xlu0 %137 }
  0xad   :  { %v143_v19 = vsel %vm141_vm9, %v138_v18, %v140_v17  ;;  %v2056_v17 = vsub.f32 %v1964_v36, %v996_v39  ;;  %v2073_v36 = vsub.f32 %v1988_v55, %v1002_v2 }
  0xae   :  { %147 = vst [vmem:[#allocation2 + $0x48] sm:$0xf] %v143_v19  ;;  %v2063_v19 = vsub.f32 %v1970_v43, %v433_v53 }
  0xaf   :  { %v2349_v55 = vand.u32 4294901760, %v2056_v17 }
  0xb0   :  { %v203_v22 = vpop.permute.xlu1 %202  ;;  %v180_v24 = vpop.permute.xlu0 %179  ;;  %v2344_v41 = vand.u32 4294901760, %v2063_v19 }
  0xb1   :  { %v186_v25 = vsel %vm185_vm8, %v180_v24, %v182_v8  ;;  %v2046_v8 = vsub.f32 %v1950_v23, %v1000_v37 }
  0xb2   :  { %v190_v27 = vsel %vm1812_vm0, %v186_v25, 0.0 }
  0xb3   :  { %192 = vst [vmem:[#allocation2 + $0x60] sm:$0xf] %v190_v27  ;;  %v2348_v27 = vand.u32 4294901760, %v2046_v8 }
  0xb4   :  { %v312_v28 = vpop.permute.xlu1 %311  ;;  %v205_v29 = vpop.permute.xlu0 %204 }
  0xb5   :  { %v208_v13 = vsel %vm206_vm10, %v203_v22, %v205_v29  ;;  %v2029_v40 = vld [vmem:[#allocation2 + $0x48] sm:$0xff]  ;;  %v2081_v29 = vsub.f32 %v1981_v49, %v429_v51 }
  0xb6   :  { %212 = vst [vmem:[#allocation2 + $0x68] sm:$0xf0] %v208_v13  ;;  %v435_v50 = vand.u32 4294901760, %v2029_v40  ;;  %v2086_v13 = vsub.f32 %v1998_v61, %v998_v0  ;;  %v1097_v61 = vsub.f32 %v2046_v8, %v2348_v27 }
  0xb8   :  { %v352_v30 = vpop.permute.xlu1 %351  ;;  %v314_v32 = vpop.permute.xlu0 %313 }
  0xb9   :  { %v357_v34 = vsel %vm185_vm8, %v352_v30, %v354_v9  ;;  %v316_v35 = vsel %vm141_vm9, %v312_v28, %v314_v32  ;;  %v2051_v9 = vsub.f32 %v425_v12, %v2040_v63  ;;  %v1085_v12 = vsub.f32 %v2056_v17, %v2349_v55 }
  0xba   :  { %v361_v38 = vsel %vm1812_vm0, %v357_v34, 0.0  ;;  %320 = vst [vmem:[#allocation2 + $0x58] sm:$0xf] %v316_v35 }
  0xbb   :  { %363 = vst [vmem:[#allocation2 + $0x70] sm:$0xf] %v361_v38 }
  0xbc   :  { %v376_v42 = vpop.permute.xlu1 %375  ;;  %v374_v44 = vpop.permute.xlu0 %373 }
  0xbd   :  { %v378_v45 = vsel %vm206_vm10, %v374_v44, %v376_v42  ;;  %v416_v48 = vld [vmem:[#allocation2 + $0x68] sm:$0xff] }
  0xbe   :  { %382 = vst [vmem:[#allocation2 + $0x78] sm:$0xf0] %v378_v45  ;;  %v439_v54 = vand.u32 4294901760, %v416_v48 }
  0xc0   :  { %v201_v56 = vpop.permute.xlu1 %200  ;;  %v136_v57 = vpop.permute.xlu0 %135  ;;  %v2036_v59 = vpack.c.bf16 %v439_v54, %v435_v50  ;;  %v2089_v2 = vsub.f32 %v416_v48, %v439_v54  ;;  %v2339_v48 = vand.u32 4294901760, %v2073_v36  ;;  %v2107_v54 = vsub.f32 %v2029_v40, %v435_v50 }
  0xc1   :  { %v207_v60 = vsel %vm206_vm10, %v201_v56, %v203_v22  ;;  %v142_v62 = vsel %vm141_vm9, %v136_v57, %v138_v18  ;;  %v414_v3 = vld [vmem:[#allocation2 + $0x58] sm:$0xff]  ;;  %v2347_v56 = vand.u32 4294901760, %v2081_v29  ;;  %v2343_v57 = vand.u32 4294901760, %v2086_v13 }
  0xc2   :  { %211 = vst [vmem:[#allocation2 + $0x60] sm:$0xf0] %v207_v60  ;;  %146 = vst [vmem:[#allocation2 + $0x40] sm:$0xf] %v142_v62  ;;  %1612 = vmatprep.subr.bf16.mxu0 %v2036_v59  ;;  %v1004_v15 = vand.u32 4294901760, %v414_v3  ;;  %v1103_v1 = vsub.f32 %v2073_v36, %v2339_v48 }
  0xc4   :  { %v372_v4 = vpop.permute.xlu1 %371  ;;  %v310_v5 = vpop.permute.xlu0 %309  ;;  %v2114_v52 = vsub.f32 %v414_v3, %v1004_v15 }
  0xc5   :  { %v377_v11 = vsel %vm206_vm10, %v372_v4, %v374_v44  ;;  %v315_v14 = vsel %vm141_vm9, %v310_v5, %v312_v28  ;;  %v418_v7 = vld [vmem:[#allocation2 + $0x78] sm:$0xff]  ;;  %v2068_v28 = vand.u32 4294901760, %v2051_v9  ;;  %v2337_v5 = vand.u32 4294901760, %v2089_v2 }
  0xc6   :  { %381 = vst [vmem:[#allocation2 + $0x70] sm:$0xf0] %v377_v11  ;;  %319 = vst [vmem:[#allocation2 + $0x50] sm:$0xf] %v315_v14  ;;  %v1008_v16 = vand.u32 4294901760, %v418_v7 }
  0xc7   :  { %v505_v0 = vsub.f32 %v2051_v9, %v2068_v28 }
  0xc8   :  { %v223_v23 = vpop.permute.xlu1 %222  ;;  %v221_v37 = vpop.permute.xlu0 %220  ;;  %v2058_v18 = vpack.c.bf16 %v1008_v16, %v1004_v15  ;;  %v2091_v30 = vsub.f32 %v418_v7, %v1008_v16 }
  0xc9   :  { %v226_v22 = vsel %vm224_vm12, %v221_v37, %v223_v23  ;;  %v411_v24 = vld [vmem:[#allocation2 + $0x40] sm:$0xff] }
  0xca   :  { %v415_v25 = vld [vmem:[#allocation2 + $0x60] sm:$0xff]  ;;  %v230_v39 = vsel %vm1917_vm4, %v226_v22, 0.0  ;;  %1660 = vmatprep.subr.bf16.mxu1 %v2058_v18  ;;  %v437_v43 = vand.u32 4294901760, %v411_v24  ;;  %v2336_v40 = vand.u32 4294901760, %v2091_v30 }
  0xcb   :  { %v441_v53 = vand.u32 4294901760, %v415_v25  ;;  %232 = vst [vmem:[#allocation2 + $0x88] sm:$0xf] %v230_v39  ;;  %v522_v39 = vsub.f32 %v2081_v29, %v2347_v56 }
  0xcc   :  { %v393_v32 = vpop.permute.xlu1 %392  ;;  %v391_v34 = vpop.permute.xlu0 %390  ;;  %v2120_v50 = vsub.f32 %v411_v24, %v437_v43 }
  0xcd   :  { %v2093_v35 = vpack.c.bf16 %v441_v53, %v437_v43  ;;  %v395_v38 = vsel %vm224_vm12, %v391_v34, %v393_v32  ;;  %v413_v49 = vld [vmem:[#allocation2 + $0x50] sm:$0xff]  ;;  %v2122_v11 = vsub.f32 %v415_v25, %v441_v53  ;;  %v506_v25 = vand.u32 4294901760, %v505_v0 }
  0xce   :  { %v417_v51 = vld [vmem:[#allocation2 + $0x70] sm:$0xff]  ;;  %v399_v42 = vsel %vm1917_vm4, %v395_v38, 0.0  ;;  %v1006_v44 = vand.u32 4294901760, %v413_v49  ;;  %v1091_v43 = vsub.f32 %v2086_v13, %v2343_v57  ;;  %v2338_v53 = vand.u32 4294901760, %v2107_v54 }
  0xcf   :  { %1614 = vmatpush1.bf16.msra.mxu0 %v2093_v35  ;;  %v1010_v45 = vand.u32 4294901760, %v417_v51  ;;  %401 = vst [vmem:[#allocation2 + $0x98] sm:$0xf] %v399_v42  ;;  %v2340_v32 = vand.u32 4294901760, %v2114_v52  ;;  %v1098_v38 = vand.u32 4294901760, %v1097_v61  ;;  %v552_v42 = vsub.f32 %v2089_v2, %v2337_v5 }
  0xd0   :  { %v389_v60 = vpop.permute.xlu1 %388  ;;  %v219_v62 = vpop.permute.xlu0 %218  ;;  %v2131_v16 = vsub.f32 %v413_v49, %v1006_v44  ;;  %v2341_v49 = vand.u32 4294901760, %v2120_v50  ;;  %v1629_v6 = vpack.c.bf16 %v2122_v11, %v2120_v50 }
  0xd1   :  { %v2116_v4 = vpack.c.bf16 %v1010_v45, %v1006_v44  ;;  %v394_v14 = vsel %vm224_vm12, %v389_v60, %v391_v34  ;;  %v225_v7 = vsel %vm224_vm12, %v219_v62, %v221_v37  ;;  %v2133_v23 = vsub.f32 %v417_v51, %v1010_v45 }
  0xd2   :  { %v398_v3 = vsel %vm1930_vm6, %v394_v14, 0.0  ;;  %v229_v15 = vsel %vm1930_vm6, %v225_v7, 0.0  ;;  %v420_v22 = vld [vmem:[#allocation2 + $0x88] sm:$0xff]  ;;  %v534_v37 = vsub.f32 %v2063_v19, %v2344_v41  ;;  %v1086_v34 = vand.u32 4294901760, %v1085_v12 }
  0xd3   :  { %1662 = vmatpush1.bf16.msra.mxu1 %v2116_v4  ;;  %400 = vst [vmem:[#allocation2 + $0x90] sm:$0xf] %v398_v3  ;;  %231 = vst [vmem:[#allocation2 + $0x80] sm:$0xf] %v229_v15  ;;  %v2135_v24 = vand.u32 4294901760, %v420_v22  ;;  %v2342_v51 = vand.u32 4294901760, %v2122_v11  ;;  %v1121_v44 = vsub.f32 %v2091_v30, %v2336_v40  ;;  %v540_v15 = vsub.f32 %v2107_v54, %v2338_v53 }
  0xd4   :  { %v2345_v45 = vand.u32 4294901760, %v2131_v16  ;;  %v2346_v60 = vand.u32 4294901760, %v2133_v23  ;;  %v535_v61 = vand.u32 4294901760, %v534_v37  ;;  %v1104_v12 = vand.u32 4294901760, %v1103_v1 }
  0xd5   :  { %444 = vmatprep.subr.mxu0 %v2135_v24  ;;  %v2165_v14 = vsub.f32 %v420_v22, %v2135_v24  ;;  %v523_v7 = vand.u32 4294901760, %v522_v39  ;;  %v1092_v3 = vand.u32 4294901760, %v1091_v43  ;;  %v1109_v40 = vsub.f32 %v2114_v52, %v2340_v32 }
  0xd6   :  { %v422_v0 = vld [vmem:[#allocation2 + $0x98] sm:$0xff]  ;;  %v1663_v5 = vpack.c.bf16 %v1098_v38, %v1086_v34  ;;  %v546_v37 = vsub.f32 %v2120_v50, %v2341_v49  ;;  %v558_v22 = vsub.f32 %v2122_v11, %v2342_v51  ;;  %v553_v53 = vand.u32 4294901760, %v552_v42 }
  0xd7   :  { %v2162_v62 = vand.u32 4294901760, %v422_v0  ;;  %v1122_v48 = vand.u32 4294901760, %v1121_v44  ;;  %v1115_v32 = vsub.f32 %v2131_v16, %v2345_v45  ;;  %v1127_v34 = vsub.f32 %v2133_v23, %v2346_v60 }
  0xd8   :  { %v563_v51 = vand.u32 4294901760, %v2165_v14  ;;  %v1617_v57 = vpack.c.bf16 %v535_v61, %v523_v7  ;;  %v1665_v41 = vpack.c.bf16 %v1104_v12, %v1092_v3  ;;  %v541_v42 = vand.u32 4294901760, %v540_v15 }
  0xd9   :  { %1013 = vmatprep.subr.mxu1 %v2162_v62  ;;  %v2181_v1 = vsub.f32 %v422_v0, %v2162_v62  ;;  %v1110_v44 = vand.u32 4294901760, %v1109_v40  ;;  %v547_v56 = vand.u32 4294901760, %v546_v37  ;;  %v559_v27 = vand.u32 4294901760, %v558_v22 }
  0xda   :  { %v419_v39 = vld [vmem:[#allocation2 + $0x80] sm:$0xff]  ;;  %v421_v43 = vld [vmem:[#allocation2 + $0x90] sm:$0xff]  ;;  %v1619_v55 = vpack.c.bf16 %v553_v53, %v541_v42  ;;  %v1116_v12 = vand.u32 4294901760, %v1115_v32  ;;  %v1128_v7 = vand.u32 4294901760, %v1127_v34  ;;  %v564_v40 = vsub.f32 %v2165_v14, %v563_v51 }
  0xdb   :  { %v2189_v38 = vand.u32 4294901760, %v419_v39  ;;  %v2191_v49 = vand.u32 4294901760, %v421_v43  ;;  %v1132_v0 = vand.u32 4294901760, %v2181_v1  ;;  %v1667_v61 = vpack.c.bf16 %v1122_v48, %v1110_v44 }
  0xdc   :  { %v1669_v48 = vpack.c.bf16 %v1128_v7, %v1116_v12  ;;  %v565_v53 = vand.u32 4294901760, %v564_v40  ;;  %v1627_v22 = vpack.c.bf16 %v2089_v2, %v2107_v54  ;;  %v1677_v21 = vpack.c.bf16 %v2133_v23, %v2131_v16 }
  0xdd   :  { %446 = vmatpush1.msra.mxu0 %v2189_v38  ;;  %v2197_v45 = vsub.f32 %v419_v39, %v2189_v38  ;;  %1015 = vmatpush1.msra.mxu1 %v2191_v49  ;;  %v2201_v60 = vsub.f32 %v421_v43, %v2191_v49  ;;  %v1133_v3 = vsub.f32 %v2181_v1, %v1132_v0  ;;  %v2360_v34 = vand.u32 4294901760, %v2081_v29 }
  0xde   :  { %1616 = vmatprep.subr.bf16.mxu0 %v1978_v47  ;;  %1664 = vmatprep.subr.bf16.mxu1 %v1663_v5  ;;  %v1621_v47 = vpack.c.bf16 %v559_v27, %v547_v56  ;;  %v1625_v56 = vpack.c.bf16 %v2063_v19, %v2081_v29  ;;  %v1675_v39 = vpack.c.bf16 %v2091_v30, %v2114_v52  ;;  %v2361_v42 = vand.u32 4294901760, %v2063_v19 }
  0xdf   :  { %507 = vmatmul.mubr.f32.vlgmr.msra.gmra.mrb[0].mxu0 %v506_v25  ;;  %1076 = vmatmul.mubr.f32.vlgmr.msra.gmra.mrb[0].mxu1 %v506_v25  ;;  %v569_v15 = vand.u32 4294901760, %v2197_v45  ;;  %v1138_v37 = vand.u32 4294901760, %v2201_v60  ;;  %v1134_v32 = vand.u32 4294901760, %v1133_v3  ;;  %v2363_v12 = vand.u32 4294901760, %v2073_v36 }
  0xe0   :  { %1618 = vmatpush1.bf16.msra.mxu0 %v1617_v57  ;;  %1666 = vmatpush1.bf16.msra.mxu1 %v1665_v41  ;;  %v1671_v41 = vpack.c.bf16 %v2046_v8, %v2056_v17  ;;  %v1673_v57 = vpack.c.bf16 %v2073_v36, %v2086_v13  ;;  %v1641_v44 = vpack.c.bf16 %v2361_v42, %v2360_v34  ;;  %v2365_v7 = vand.u32 4294901760, %v2089_v2 }
  0xe1   :  { %1620 = vmatprep.subr.bf16.mxu0 %v1619_v55  ;;  %1668 = vmatprep.subr.bf16.mxu1 %v1667_v61  ;;  %v570_v5 = vsub.f32 %v2197_v45, %v569_v15  ;;  %v1139_v25 = vsub.f32 %v2201_v60, %v1138_v37  ;;  %v2362_v61 = vand.u32 4294901760, %v2086_v13  ;;  %v2366_v40 = vand.u32 4294901760, %v2114_v52 }
  0xe2   :  { %627 = vmatprep.mubr.f32.mxu0 %v1749_v31  ;;  %1196 = vmatprep.mubr.f32.mxu1 %v1749_v31  ;;  %v2367_v29 = vand.u32 4294901760, %v2091_v30  ;;  %v2368_v36 = vand.u32 4294901760, %v2120_v50  ;;  %v2369_v13 = vand.u32 4294901760, %v2122_v11 }
  0xe3   :  { %v571_v27 = vand.u32 4294901760, %v570_v5  ;;  %v1140_v55 = vand.u32 4294901760, %v1139_v25 }
  0xe4   :  { %1622 = vmatpush1.bf16.msra.mxu0 %v1621_v47  ;;  %1670 = vmatpush1.bf16.msra.mxu1 %v1669_v48  ;;  %v1691_v19 = vpack.c.bf16 %v2367_v29, %v2366_v40  ;;  %v1645_v3 = vpack.c.bf16 %v2369_v13, %v2368_v36 }
  0xe5   :  { %566 = vmatprep.subr.mxu0 %v565_v53  ;;  %1135 = vmatprep.subr.mxu1 %v1134_v32 }
  0xe8   :  { %572 = vmatpush1.msra.mxu0 %v571_v27  ;;  %1141 = vmatpush1.msra.mxu1 %v1140_v55 }
  0xe9   :  { %1624 = vmatprep.subr.bf16.mxu0 %v1623_v26  ;;  %1672 = vmatprep.subr.bf16.mxu1 %v1671_v41  ;;  %v2358_v26 = vand.u32 4294901760, %v2056_v17  ;;  %v1689_v17 = vpack.c.bf16 %v2363_v12, %v2362_v61 }
  0xea   :  { %629 = vmatmul.mubr.f32.vlgmr.msra.gmra.mrb[0].mxu0 %v2040_v63  ;;  %1198 = vmatmul.mubr.f32.vlgmr.msra.gmra.mrb[0].mxu1 %v2040_v63 }
  0xeb   :  { %1626 = vmatpush1.bf16.msra.mxu0 %v1625_v56  ;;  %1674 = vmatpush1.bf16.msra.mxu1 %v1673_v57 }
  0xec   :  { %1628 = vmatprep.subr.bf16.mxu0 %v1627_v22  ;;  %1676 = vmatprep.subr.bf16.mxu1 %v1675_v39 }
  0xed   :  { %719 = vmatprep.mubr.f32.mxu0 %v1749_v31  ;;  %1288 = vmatprep.mubr.f32.mxu1 %v1749_v31 }
  0xef   :  { %1630 = vmatpush1.bf16.msra.mxu0 %v1629_v6  ;;  %1678 = vmatpush1.bf16.msra.mxu1 %v1677_v21 }
  0xf0   :  { %661 = vmatprep.subr.mxu0 %v2165_v14  ;;  %1230 = vmatprep.subr.mxu1 %v2181_v1 }
  0xf3   :  { %664 = vmatpush1.msra.mxu0 %v2197_v45  ;;  %1233 = vmatpush1.msra.mxu1 %v2201_v60 }
  0xf4   :  { %1632 = vmatprep.subr.bf16.mxu0 %v1944_v20  ;;  %1680 = vmatprep.subr.bf16.mxu1 %v1976_v46 }
  0xf5   :  { %722 = vmatmul.mubr.f32.vlgmr.msra.gmra.mrb[0].mxu0 %v2051_v9  ;;  %1291 = vmatmul.mubr.f32.vlgmr.msra.gmra.mrb[0].mxu1 %v2051_v9  ;;  %v2359_v9 = vand.u32 4294901760, %v2046_v8  ;;  %v2364_v8 = vand.u32 4294901760, %v2107_v54  ;;  %v2371_v54 = vand.u32 4294901760, %v2133_v23 }
  0xf6   :  { %1634 = vmatpush1.bf16.msra.mxu0 %v1994_v58  ;;  %1682 = vmatpush1.bf16.msra.mxu1 %v2011_v10 }
  0xf7   :  { %1636 = vmatprep.subr.bf16.mxu0 %v2036_v59  ;;  %1684 = vmatprep.subr.bf16.mxu1 %v2058_v18  ;;  %v1687_v43 = vpack.c.bf16 %v2359_v9, %v2358_v26 }
  0xf8   :  { %802 = vmatprep.mubr.f32.mxu0 %v1749_v31  ;;  %1371 = vmatprep.mubr.f32.mxu1 %v1749_v31 }
  0xfa   :  { %1638 = vmatpush1.bf16.msra.mxu0 %v2093_v35  ;;  %1686 = vmatpush1.bf16.msra.mxu1 %v2116_v4 }
  0xfb   :  { %745 = vmatprep.subr.mxu0 %v2135_v24  ;;  %1314 = vmatprep.subr.mxu1 %v2162_v62 }
  0xfe   :  { %747 = vmatpush1.msra.mxu0 %v2189_v38  ;;  %1316 = vmatpush1.msra.mxu1 %v2191_v49 }
  0xff   :  { %1640 = vmatprep.subr.bf16.mxu0 %v1960_v33  ;;  %1688 = vmatprep.subr.bf16.mxu1 %v1687_v43  ;;  %v1643_v33 = vpack.c.bf16 %v2365_v7, %v2364_v8 }
 0x100   :  { %806 = vmatmul.mubr.f32.vlgmr.msra.gmra.mrb[0].mxu0 %v2068_v28  ;;  %1375 = vmatmul.mubr.f32.vlgmr.msra.gmra.mrb[0].mxu1 %v2068_v28  ;;  %v2370_v28 = vand.u32 4294901760, %v2131_v16 }
 0x101   :  { %1642 = vmatpush1.bf16.msra.mxu0 %v1641_v44  ;;  %1690 = vmatpush1.bf16.msra.mxu1 %v1689_v17 }
 0x102   :  { %1644 = vmatprep.subr.bf16.mxu0 %v1643_v33  ;;  %1692 = vmatprep.subr.bf16.mxu1 %v1691_v19  ;;  %v1693_v2 = vpack.c.bf16 %v2371_v54, %v2370_v28 }
 0x103   :  { %906 = vmatprep.mubr.f32.mxu0 %v1749_v31  ;;  %1475 = vmatprep.mubr.f32.mxu1 %v1749_v31 }
 0x105   :  { %1646 = vmatpush1.bf16.msra.mxu0 %v1645_v3  ;;  %1694 = vmatpush1.bf16.msra.mxu1 %v1693_v2 }
 0x106   :  { %847 = vmatprep.subr.mxu0 %v563_v51  ;;  %1416 = vmatprep.subr.mxu1 %v1132_v0 }
 0x109   :  { %851 = vmatpush1.msra.mxu0 %v569_v15  ;;  %1420 = vmatpush1.msra.mxu1 %v1138_v37 }
 0x10a   :  { %1648 = vmatprep.subr.bf16.mxu0 %v1944_v20  ;;  %1696 = vmatprep.subr.bf16.mxu1 %v1976_v46  ;;  %v1569_v20 = vpop.permute.xlu0 %1568 }
 0x10b   :  { %908 = vmatmul.mubr.f32.vlgmr.msra.gmra.mrb[0].mxu0 %v2040_v63  ;;  %1477 = vmatmul.mubr.f32.vlgmr.msra.gmra.mrb[0].mxu1 %v2040_v63 }
 0x10c   :  { %1650 = vmatpush1.bf16.msra.mxu0 %v1994_v58  ;;  %1698 = vmatpush1.bf16.msra.mxu1 %v2011_v10 }
 0x10d   :  { %1652 = vmatprep.subr.bf16.mxu0 %v2036_v59  ;;  %1700 = vmatprep.subr.bf16.mxu1 %v2058_v18 }
 0x10e   :  { %988 = vmatprep.mubr.f32.mxu0 %v1749_v31  ;;  %1557 = vmatprep.mubr.f32.mxu1 %v1749_v31 }
 0x110   :  { %1654 = vmatpush1.bf16.msra.mxu0 %v2093_v35  ;;  %1702 = vmatpush1.bf16.msra.mxu1 %v2116_v4 }
 0x111   :  { %931 = vmatprep.subr.mxu0 %v2135_v24  ;;  %1500 = vmatprep.subr.mxu1 %v2162_v62 }
 0x114   :  { %933 = vmatpush1.msra.mxu0 %v2189_v38  ;;  %1502 = vmatpush1.msra.mxu1 %v2191_v49 }
 0x115   :  { %990 = vmatmul.mubr.f32.vlgmr.msra.gmra.mrb[0].mxu0 %v2040_v63  ;;  %1559 = vmatmul.mubr.f32.vlgmr.msra.gmra.mrb[0].mxu1 %v2040_v63 }
 0x1e8   :  { %v1560_v46 = vpop.f32.mrb[0].mxu1  ;;  %v991_v58 = vpop.f32.mrb[0].mxu0 }
 0x1e9   :  { %v1577_v31 = vadd.f32 %v1569_v20, %v1560_v46  ;;  %v1571_v10 = vadd.f32 %v1569_v20, %v991_v58  ;;  %v993_v59 = vpop.f32.mrb[1].mxu0  ;;  %v1562_v18 = vpop.f32.mrb[1].mxu1 }
 0x1ea   :  { %v1572_v30 = vadd.f32 %v1569_v20, %v993_v59  ;;  %v1578_v35 = vadd.f32 %v1569_v20, %v1562_v18 }
 0x1eb   :  { %v1579_v52 = vmax.f32 %v1577_v31, 0.0  ;;  %v1573_v4 = vmax.f32 %v1571_v10, 0.0 }
 0x1ec   :  { %v1574_v50 = vmax.f32 %v1572_v30, 0.0  ;;  %v1580_v11 = vmax.f32 %v1578_v35, 0.0 }
 0x1ed   :  { %1605 = vst [vmem:[%s2335_s3 + $0x10] sm:$0xff] %v1579_v52  ;;  %1575 = vst [vmem:[%s2335_s3] sm:$0xff] %v1573_v4 }
 0x1ee   :  { %1576 = vst [vmem:[%s2335_s3 + $0x8] sm:$0xff] %v1574_v50  ;;  %1606 = vst [vmem:[%s2335_s3 + $0x18] sm:$0xff] %v1580_v11 }

</bundles_post_ra>
